<compile_context>
chip_gen: v7x
topology: tpu7x:2x2x1
jax: 0.10.0
libtpu: 0.0.40
codegen_flags: <defaults>
</compile_context>

<pallas_src>
import jax
import jax.numpy as jnp
from jax import lax
from jax.experimental import pallas as pl
from jax.experimental.pallas import tpu as pltpu

EPS = 1e-5
LANE = 128


def _round_up(v, m):
    return ((v + m - 1) // m) * m


def _pad2(a, rows, cols):
    return jnp.pad(a, ((0, rows - a.shape[0]), (0, cols - a.shape[1])))


def _spec(shape, index_map, bufs=None):
    """BlockSpec helper; deeper multi-buffering is optional (graceful fallback)."""
    if bufs is not None:
        try:
            return pl.BlockSpec(shape, index_map, pipeline_mode=pl.Buffered(bufs))
        except (TypeError, AttributeError):
            pass
    return pl.BlockSpec(shape, index_map)


def _physical_vmem_bytes():
    try:
        return int(pltpu.get_tpu_info().vmem_capacity_bytes)
    except Exception:
        return 64 * 1024 * 1024            # conservative: v7x per-TensorCore VMEM


def _pick_tiling(fout, tile_f):
    fout_p = _round_up(fout, LANE)
    if tile_f is None:
        if fout_p <= 512:
            tile_f = fout_p                # single tile
        else:
            tile_f = 0
            for t in (512, 448, 384, 320, 256, 192):
                if fout_p % t == 0:
                    tile_f = t
                    break
            if tile_f == 0:                # pad out-features up to a 256-lane tile multiple
                tile_f = 256
                fout_p = _round_up(fout_p, tile_f)
    else:
        assert tile_f % LANE == 0, "tile_f must be a multiple of 128 lanes"
        fout_p = _round_up(fout_p, tile_f)
    return fout_p, tile_f


def _make_kernel(has_projection, use_scratch_acc, n_tiles, tile_f):
    """Kernel specialized (at trace time) on shortcut type / accumulator placement."""

    def kernel(*refs):
        if has_projection:
            x_ref, w1_ref, w2_ref, ws_ref, vt_ref, vf_ref, o_ref = refs[:7]
            scratch = refs[7:]
        else:
            x_ref, w1_ref, w2_ref, vt_ref, vf_ref, o_ref = refs[:6]
            scratch = refs[6:]
        acc_ref = scratch[0] if use_scratch_acc else o_ref   # identity+f32-out: acc in o_ref

        j = pl.program_id(0)

        @pl.when(j == 0)
        def _():
            acc_ref[...] = jnp.zeros_like(acc_ref)

        x = x_ref[...]                          # (N, Fin_p), compute dtype, VMEM-resident
        inv_n = 1.0 / x.shape[0]

        # ---- linear1 column tile -> BN1 (train stats) -> ReLU --------------------
        # linear1's bias is omitted: a per-feature constant is exactly cancelled by
        # BN's batch-mean subtraction.  Shifted two-pass variance, BN math in f32.
        y1 = jnp.dot(x, w1_ref[...], preferred_element_type=jnp.float32)
        m1 = jnp.sum(y1, axis=0, keepdims=True) * inv_n
        d1 = y1 - m1
        v1 = jnp.sum(d1 * d1, axis=0, keepdims=True) * inv_n
        h = d1 * lax.rsqrt(v1 + EPS) * vt_ref[0:1, :] + vt_ref[1:2, :]
        h = jnp.maximum(h, 0.0).astype(w2_ref.dtype)

        # ---- linear2: accumulate partial products across feature tiles -----------
        acc_ref[...] += jnp.dot(h, w2_ref[...], preferred_element_type=jnp.float32)

        # ---- projection shortcut: streamed per tile into the resident output -----
        if has_projection:
            col = pl.multiple_of(j * tile_f, tile_f)
            sc = jnp.dot(x, ws_ref[...], preferred_element_type=jnp.float32)
            sc = sc + vt_ref[2:3, :]            # shortcut bias kept (added post-BN2)
            o_ref[:, pl.ds(col, tile_f)] = sc.astype(o_ref.dtype)

        # ---- last tile: BN2 -> + shortcut -> ReLU ---------------------------------
        @pl.when(j == n_tiles - 1)
        def _():
            acc = acc_ref[...]
            m2 = jnp.sum(acc, axis=0, keepdims=True) * inv_n
            d2 = acc - m2
            v2 = jnp.sum(d2 * d2, axis=0, keepdims=True) * inv_n
            out2 = d2 * lax.rsqrt(v2 + EPS) * vf_ref[0:1, :] + vf_ref[1:2, :]
            if has_projection:
                shortcut = o_ref[...].astype(jnp.float32)   # slabs written tile-by-tile
            else:
                shortcut = x.astype(jnp.float32)            # identity: no matmul, no DMA
            o_ref[...] = jnp.maximum(out2 + shortcut, 0.0).astype(o_ref.dtype)

    return kernel


def residual_block(x, params, *, compute_dtype=jnp.float32,
                   out_dtype=jnp.float32, tile_f=None):
    n, fin = x.shape
    fout = params["w1"].shape[1]
    has_projection = params["ws"] is not None
    if not has_projection:
        assert fin == fout, "identity shortcut requires in_features == out_features"

    fout_p, tile_f = _pick_tiling(fout, tile_f)
    n_tiles = fout_p // tile_f
    fin_p = fout_p if not has_projection else _round_up(fin, LANE)
    use_scratch_acc = has_projection or (jnp.dtype(out_dtype) != jnp.dtype(jnp.float32))
    bufs = 3 if n_tiles >= 3 else None          # deeper weight pipelining when it pays off

    # Pad features to full 128-lane vregs (dense MXU tiles / unmasked stores).
    xp = _pad2(x, n, fin_p).astype(compute_dtype)
    w1 = _pad2(params["w1"], fin_p, fout_p).astype(compute_dtype)
    w2 = _pad2(params["w2"], fout_p, fout_p).astype(compute_dtype)

    g1 = _pad2(params["g1"], 1, fout_p)
    be1 = _pad2(params["be1"], 1, fout_p)
    g2 = _pad2(params["g2"], 1, fout_p)
    be2 = _pad2(params["be2"], 1, fout_p)

    if has_projection:
        ws = _pad2(params["ws"], fin_p, fout_p).astype(compute_dtype)
        bs = _pad2(params["bs"], 1, fout_p)
        vecs_tiled = jnp.concatenate([g1, be1, bs], axis=0)      # (3, Fout_p) f32
    else:
        vecs_tiled = jnp.concatenate([g1, be1], axis=0)          # (2, Fout_p) f32
    vecs_full = jnp.concatenate([g2, be2], axis=0)               # (2, Fout_p) f32
    nv = vecs_tiled.shape[0]

    in_specs = [
        _spec((n, fin_p), lambda j: (0, 0)),                     # x: VMEM-resident
        _spec((fin_p, tile_f), lambda j: (0, j), bufs),          # w1: column tiles
        _spec((tile_f, fout_p), lambda j: (j, 0), bufs),         # w2: row tiles
    ]
    args = [xp, w1, w2]
    if has_projection:
        in_specs.append(_spec((fin_p, tile_f), lambda j: (0, j), bufs))   # ws: streamed
        args.append(ws)
    in_specs.append(_spec((nv, tile_f), lambda j: (0, j)))                # g1/be1[/bs]
    args.append(vecs_tiled)
    in_specs.append(_spec((2, fout_p), lambda j: (0, 0)))                 # g2/be2
    args.append(vecs_full)

    scratch_shapes = []
    if use_scratch_acc:
        scratch_shapes.append(pltpu.VMEM((n, fout_p), jnp.float32))

    # ---- VMEM budget (from the actual buffers) + cost hints -------------------------
    cdb = jnp.dtype(compute_dtype).itemsize
    odb = jnp.dtype(out_dtype).itemsize
    nbuf = bufs if bufs is not None else 2
    resident = (2 * n * fin_p * cdb                     # x (constant-index block)
                + 2 * n * fout_p * odb                  # resident output block
                + (n * fout_p * 4 if use_scratch_acc else 0)
                + nbuf * fin_p * tile_f * cdb           # w1 tiles
                + nbuf * tile_f * fout_p * cdb          # w2 tiles
                + (nbuf * fin_p * tile_f * cdb if has_projection else 0)
                + 4 * 8 * fout_p * 4)                   # per-feature vectors (generous)
    phys = _physical_vmem_bytes()
    vmem_limit = int(min(max(int(1.4 * resident), 32 * 1024 * 1024),
                         max(phys - 8 * 1024 * 1024, 32 * 1024 * 1024)))

    flops = 2 * n * fin_p * fout_p + 2 * n * fout_p * fout_p + 14 * n * fout_p
    if has_projection:
        flops += 2 * n * fin_p * fout_p
    bytes_accessed = int(sum(a.size * a.dtype.itemsize for a in args) + n * fout_p * odb)

    out = pl.pallas_call(
        _make_kernel(has_projection, use_scratch_acc, n_tiles, tile_f),
        out_shape=jax.ShapeDtypeStruct((n, fout_p), out_dtype),
        grid_spec=pltpu.PrefetchScalarGridSpec(
            num_scalar_prefetch=0,
            grid=(n_tiles,),
            in_specs=in_specs,
            out_specs=pl.BlockSpec((n, fout_p), lambda j: (0, 0)),
            scratch_shapes=scratch_shapes,
        ),
        compiler_params=pltpu.CompilerParams(
            dimension_semantics=("arbitrary",),   # reduction axis (BN + K-accumulation)
            vmem_limit_bytes=vmem_limit,
        ),
        cost_estimate=pl.CostEstimate(flops=int(flops),
                                      transcendentals=int(2 * fout_p),
                                      bytes_accessed=bytes_accessed),
    )(*args)

    return out[:, :fout]


def init_params(key, in_features, out_features):
    """PyTorch-Linear-style init (uniform(-1/sqrt(fan_in), +1/sqrt(fan_in)))."""
    ks = jax.random.split(key, 6)

    def lin(kw, kb, fan_in, fan_out):
        bound = 1.0 / float(fan_in) ** 0.5
        w = jax.random.uniform(kw, (fan_in, fan_out), jnp.float32, -bound, bound)
        b = jax.random.uniform(kb, (1, fan_out), jnp.float32, -bound, bound)
        return w, b

    w1, b1 = lin(ks[0], ks[1], in_features, out_features)
    w2, b2 = lin(ks[2], ks[3], out_features, out_features)
    if in_features != out_features:
        ws, bs = lin(ks[4], ks[5], in_features, out_features)
    else:
        ws, bs = None, None            # nn.Identity() shortcut

    ones = jnp.ones((1, out_features), jnp.float32)
    zeros = jnp.zeros((1, out_features), jnp.float32)
    return dict(w1=w1, b1=b1, w2=w2, b2=b2, ws=ws, bs=bs,
                g1=ones, be1=zeros, g2=ones, be2=zeros)


def residual_block_ref(x, p, compute_dtype=jnp.float32):
    """Pure-JAX reference, faithful to the PyTorch module (biases included, train-mode BN)."""
    cd = compute_dtype
    hp = lax.Precision.HIGHEST

    def bn(y, g, b):
        m = jnp.mean(y, axis=0, keepdims=True)
        v = jnp.mean((y - m) ** 2, axis=0, keepdims=True)
        return (y - m) / jnp.sqrt(v + EPS) * g + b

    xc = x.astype(cd)
    if p["ws"] is not None:
        identity = jnp.dot(xc, p["ws"].astype(cd), precision=hp,
                           preferred_element_type=jnp.float32) + p["bs"]
    else:
        identity = xc.astype(jnp.float32)
    out = jnp.dot(xc, p["w1"].astype(cd), precision=hp,
                  preferred_element_type=jnp.float32) + p["b1"]
    out = jnp.maximum(bn(out, p["g1"], p["be1"]), 0.0)
    out = jnp.dot(out.astype(cd), p["w2"].astype(cd), precision=hp,
                  preferred_element_type=jnp.float32) + p["b2"]
    out = bn(out, p["g2"], p["be2"])
    return jnp.maximum(out + identity, 0.0)


if __name__ == "__main__":
    key = jax.random.PRNGKey(0)

    configs = [
        # (batch, fin, fout, compute_dtype, out_dtype, tile_f, tolerance)
        (8, 16, 32, jnp.float32, jnp.float32, None, 1e-3),      # projection shortcut
        (8, 32, 32, jnp.float32, jnp.float32, None, 1e-3),      # identity shortcut
        (16, 24, 200, jnp.bfloat16, jnp.float32, 128, 3e-2),    # bf16 weights, 2 tiles
        (32, 96, 1536, jnp.bfloat16, jnp.bfloat16, None, 5e-2), # 3 tiles, streamed ws, Buffered(3)
    ]
    for i, (batch, fin, fout, cd, od, tf, tol) in enumerate(configs):
        key, kx, kp = jax.random.split(key, 3)
        x = jax.random.normal(kx, (batch, fin), jnp.float32)
        params = init_params(kp, fin, fout)

        out = jax.block_until_ready(
            residual_block(x, params, compute_dtype=cd, out_dtype=od, tile_f=tf))
        ref = residual_block_ref(x, params, compute_dtype=cd)

        assert out.shape == (batch, fout), f"config {i}: bad shape {out.shape}"
        assert jnp.allclose(out.astype(jnp.float32), ref, atol=tol, rtol=tol), \
            f"config {i}: mismatch vs JAX reference"

    print("KERNEL_OK")
</pallas_src>

<mosaic_0001>
module attributes {stable_mosaic.version = 11 : i64} {
  func.func @kernel(%arg0: i32, %arg1: memref<8x128xf32, #tpu.memory_space<vmem>>, %arg2: memref<128x128xf32, #tpu.memory_space<vmem>>, %arg3: memref<128x128xf32, #tpu.memory_space<vmem>>, %arg4: memref<128x128xf32, #tpu.memory_space<vmem>>, %arg5: memref<3x128xf32, #tpu.memory_space<vmem>>, %arg6: memref<2x128xf32, #tpu.memory_space<vmem>>, %arg7: memref<8x128xf32, #tpu.memory_space<vmem>>, %arg8: memref<8x128xf32, #tpu.memory_space<vmem>>) attributes {dimension_semantics = [#tpu.dimension_semantics<arbitrary>], iteration_bounds = array<i64: 1>, scalar_prefetch = 0 : i64, scratch_operands = 1 : i64, tpu.core_type = #tpu.core_type<tc>, window_params = [{pipeline_mode = #tpu.pipeline_mode<synchronous>, transform_indices = @transform_0, window_bounds = array<i64: 8, 128>}, {transform_indices = @transform_1, window_bounds = array<i64: 128, 128>}, {transform_indices = @transform_2, window_bounds = array<i64: 128, 128>}, {transform_indices = @transform_3, window_bounds = array<i64: 128, 128>}, {transform_indices = @transform_4, window_bounds = array<i64: 3, 128>}, {pipeline_mode = #tpu.pipeline_mode<synchronous>, transform_indices = @transform_5, window_bounds = array<i64: 2, 128>}, {pipeline_mode = #tpu.pipeline_mode<synchronous>, transform_indices = @transform_6, window_bounds = array<i64: 8, 128>}]} {
    %c0_i32 = arith.constant 0 : i32
    %0 = arith.cmpi eq, %arg0, %c0_i32 : i32
    %1 = arith.extui %0 : i1 to i32
    %c0_i32_0 = arith.constant 0 : i32
    %2 = arith.cmpi ne, %1, %c0_i32_0 : i32
    scf.if %2 {
      %cst_27 = arith.constant 0.000000e+00 : f32
      %47 = vector.broadcast %cst_27 : f32 to vector<8x128xf32>
      %c0_28 = arith.constant 0 : index
      %c0_29 = arith.constant 0 : index
      %48 = vector.load %arg8[%c0_28, %c0_29] : memref<8x128xf32, #tpu.memory_space<vmem>>, vector<8x128xf32>
      tpu.vector_store %arg8[%c0_28, %c0_29], %47 {strides = array<i32>} : memref<8x128xf32, #tpu.memory_space<vmem>>, vector<8x128xf32>,
    } else {
    }
    %c0 = arith.constant 0 : index
    %c0_1 = arith.constant 0 : index
    %3 = vector.load %arg1[%c0, %c0_1] : memref<8x128xf32, #tpu.memory_space<vmem>>, vector<8x128xf32>
    %c0_2 = arith.constant 0 : index
    %c0_3 = arith.constant 0 : index
    %4 = vector.load %arg2[%c0_2, %c0_3] : memref<128x128xf32, #tpu.memory_space<vmem>>, vector<128x128xf32>
    %cst = arith.constant dense<0.000000e+00> : vector<8x128xf32>
    %5 = tpu.matmul %3, %4, %cst {dimension_numbers = #tpu.dot_dimension_numbers<[1], [0], [0], [1], [0, 0, 1, 1], [], []>} : vector<8x128xf32>, vector<128x128xf32>, vector<8x128xf32> -> vector<8x128xf32>
    %cst_4 = arith.constant dense<0.000000e+00> : vector<128xf32>
    %6 = vector.multi_reduction <add>, %5, %cst_4 [0] : vector<8x128xf32> to vector<128xf32>
    %7 = vector.shape_cast %6 : vector<128xf32> to vector<1x128xf32>
    %cst_5 = arith.constant 1.250000e-01 : f32
    %8 = vector.broadcast %cst_5 : f32 to vector<1x128xf32>
    %9 = arith.mulf %7, %8 : vector<1x128xf32>
    %10 = vector.broadcast %9 : vector<1x128xf32> to vector<8x128xf32>
    %11 = arith.subf %5, %10 : vector<8x128xf32>
    %12 = arith.mulf %11, %11 : vector<8x128xf32>
    %cst_6 = arith.constant dense<0.000000e+00> : vector<128xf32>
    %13 = vector.multi_reduction <add>, %12, %cst_6 [0] : vector<8x128xf32> to vector<128xf32>
    %14 = vector.shape_cast %13 : vector<128xf32> to vector<1x128xf32>
    %cst_7 = arith.constant 1.250000e-01 : f32
    %15 = vector.broadcast %cst_7 : f32 to vector<1x128xf32>
    %16 = arith.mulf %14, %15 : vector<1x128xf32>
    %cst_8 = arith.constant 9.99999974E-6 : f32
    %17 = vector.broadcast %cst_8 : f32 to vector<1x128xf32>
    %18 = arith.addf %16, %17 : vector<1x128xf32>
    %19 = math.rsqrt %18 : vector<1x128xf32>
    %20 = vector.broadcast %19 : vector<1x128xf32> to vector<8x128xf32>
    %21 = arith.mulf %11, %20 : vector<8x128xf32>
    %c0_9 = arith.constant 0 : index
    %c0_10 = arith.constant 0 : index
    %22 = vector.load %arg5[%c0_9, %c0_10] : memref<3x128xf32, #tpu.memory_space<vmem>>, vector<1x128xf32>
    %23 = vector.broadcast %22 : vector<1x128xf32> to vector<8x128xf32>
    %24 = arith.mulf %21, %23 : vector<8x128xf32>
    %c1 = arith.constant 1 : index
    %c0_11 = arith.constant 0 : index
    %25 = vector.load %arg5[%c1, %c0_11] : memref<3x128xf32, #tpu.memory_space<vmem>>, vector<1x128xf32>
    %26 = vector.broadcast %25 : vector<1x128xf32> to vector<8x128xf32>
    %27 = arith.addf %24, %26 : vector<8x128xf32>
    %cst_12 = arith.constant 0.000000e+00 : f32
    %28 = vector.broadcast %cst_12 : f32 to vector<8x128xf32>
    %29 = arith.maximumf %27, %28 : vector<8x128xf32>
    %c0_13 = arith.constant 0 : index
    %c0_14 = arith.constant 0 : index
    %30 = vector.load %arg8[%c0_13, %c0_14] : memref<8x128xf32, #tpu.memory_space<vmem>>, vector<8x128xf32>
    %c0_15 = arith.constant 0 : index
    %c0_16 = arith.constant 0 : index
    %31 = vector.load %arg3[%c0_15, %c0_16] : memref<128x128xf32, #tpu.memory_space<vmem>>, vector<128x128xf32>
    %cst_17 = arith.constant dense<0.000000e+00> : vector<8x128xf32>
    %32 = tpu.matmul %29, %31, %cst_17 {dimension_numbers = #tpu.dot_dimension_numbers<[1], [0], [0], [1], [0, 0, 1, 1], [], []>} : vector<8x128xf32>, vector<128x128xf32>, vector<8x128xf32> -> vector<8x128xf32>
    %33 = arith.addf %30, %32 : vector<8x128xf32>
    %c0_18 = arith.constant 0 : index
    %c0_19 = arith.constant 0 : index
    %34 = vector.load %arg8[%c0_18, %c0_19] : memref<8x128xf32, #tpu.memory_space<vmem>>, vector<8x128xf32>
    tpu.vector_store %arg8[%c0_18, %c0_19], %33 {strides = array<i32>} : memref<8x128xf32, #tpu.memory_space<vmem>>, vector<8x128xf32>,
    %c128_i32 = arith.constant 128 : i32
    %35 = arith.muli %arg0, %c128_i32 : i32
    %36 = tpu.assume_multiple %35, 128 : i32
    %c0_20 = arith.constant 0 : index
    %c0_21 = arith.constant 0 : index
    %37 = vector.load %arg4[%c0_20, %c0_21] : memref<128x128xf32, #tpu.memory_space<vmem>>, vector<128x128xf32>
    %cst_22 = arith.constant dense<0.000000e+00> : vector<8x128xf32>
    %38 = tpu.matmul %3, %37, %cst_22 {dimension_numbers = #tpu.dot_dimension_numbers<[1], [0], [0], [1], [0, 0, 1, 1], [], []>} : vector<8x128xf32>, vector<128x128xf32>, vector<8x128xf32> -> vector<8x128xf32>
    %c2 = arith.constant 2 : index
    %c0_23 = arith.constant 0 : index
    %39 = vector.load %arg5[%c2, %c0_23] : memref<3x128xf32, #tpu.memory_space<vmem>>, vector<1x128xf32>
    %40 = vector.broadcast %39 : vector<1x128xf32> to vector<8x128xf32>
    %41 = arith.addf %38, %40 : vector<8x128xf32>
    %c0_24 = arith.constant 0 : index
    %42 = arith.index_cast %36 : i32 to index
    %43 = vector.load %arg7[%c0_24, %42] : memref<8x128xf32, #tpu.memory_space<vmem>>, vector<8x128xf32>
    tpu.vector_store %arg7[%c0_24, %42], %41 {strides = array<i32>} : memref<8x128xf32, #tpu.memory_space<vmem>>, vector<8x128xf32>,
    %c0_i32_25 = arith.constant 0 : i32
    %44 = arith.cmpi eq, %arg0, %c0_i32_25 : i32
    %45 = arith.extui %44 : i1 to i32
    %c0_i32_26 = arith.constant 0 : i32
    %46 = arith.cmpi ne, %45, %c0_i32_26 : i32
    scf.if %46 {
      %c0_27 = arith.constant 0 : index
      %c0_28 = arith.constant 0 : index
      %47 = vector.load %arg8[%c0_27, %c0_28] : memref<8x128xf32, #tpu.memory_space<vmem>>, vector<8x128xf32>
      %cst_29 = arith.constant dense<0.000000e+00> : vector<128xf32>
      %48 = vector.multi_reduction <add>, %47, %cst_29 [0] : vector<8x128xf32> to vector<128xf32>
      %49 = vector.shape_cast %48 : vector<128xf32> to vector<1x128xf32>
      %cst_30 = arith.constant 1.250000e-01 : f32
      %50 = vector.broadcast %cst_30 : f32 to vector<1x128xf32>
      %51 = arith.mulf %49, %50 : vector<1x128xf32>
      %52 = vector.broadcast %51 : vector<1x128xf32> to vector<8x128xf32>
      %53 = arith.subf %47, %52 : vector<8x128xf32>
      %54 = arith.mulf %53, %53 : vector<8x128xf32>
      %cst_31 = arith.constant dense<0.000000e+00> : vector<128xf32>
      %55 = vector.multi_reduction <add>, %54, %cst_31 [0] : vector<8x128xf32> to vector<128xf32>
      %56 = vector.shape_cast %55 : vector<128xf32> to vector<1x128xf32>
      %cst_32 = arith.constant 1.250000e-01 : f32
      %57 = vector.broadcast %cst_32 : f32 to vector<1x128xf32>
      %58 = arith.mulf %56, %57 : vector<1x128xf32>
      %cst_33 = arith.constant 9.99999974E-6 : f32
      %59 = vector.broadcast %cst_33 : f32 to vector<1x128xf32>
      %60 = arith.addf %58, %59 : vector<1x128xf32>
      %61 = math.rsqrt %60 : vector<1x128xf32>
      %62 = vector.broadcast %61 : vector<1x128xf32> to vector<8x128xf32>
      %63 = arith.mulf %53, %62 : vector<8x128xf32>
      %c0_34 = arith.constant 0 : index
      %c0_35 = arith.constant 0 : index
      %64 = vector.load %arg6[%c0_34, %c0_35] : memref<2x128xf32, #tpu.memory_space<vmem>>, vector<1x128xf32>
      %65 = vector.broadcast %64 : vector<1x128xf32> to vector<8x128xf32>
      %66 = arith.mulf %63, %65 : vector<8x128xf32>
      %c1_36 = arith.constant 1 : index
      %c0_37 = arith.constant 0 : index
      %67 = vector.load %arg6[%c1_36, %c0_37] : memref<2x128xf32, #tpu.memory_space<vmem>>, vector<1x128xf32>
      %68 = vector.broadcast %67 : vector<1x128xf32> to vector<8x128xf32>
      %69 = arith.addf %66, %68 : vector<8x128xf32>
      %c0_38 = arith.constant 0 : index
      %c0_39 = arith.constant 0 : index
      %70 = vector.load %arg7[%c0_38, %c0_39] : memref<8x128xf32, #tpu.memory_space<vmem>>, vector<8x128xf32>
      %71 = arith.addf %69, %70 : vector<8x128xf32>
      %cst_40 = arith.constant 0.000000e+00 : f32
      %72 = vector.broadcast %cst_40 : f32 to vector<8x128xf32>
      %73 = arith.maximumf %71, %72 : vector<8x128xf32>
      %c0_41 = arith.constant 0 : index
      %c0_42 = arith.constant 0 : index
      %74 = vector.load %arg7[%c0_41, %c0_42] : memref<8x128xf32, #tpu.memory_space<vmem>>, vector<8x128xf32>
      tpu.vector_store %arg7[%c0_41, %c0_42], %73 {strides = array<i32>} : memref<8x128xf32, #tpu.memory_space<vmem>>, vector<8x128xf32>,
    } else {
    }
    return
  }
  func.func @transform_0(%arg0: i32) -> (i32, i32) {
    %c0_i32 = arith.constant 0 : i32
    %c0_i32_0 = arith.constant 0 : i32
    %c0_i32_1 = arith.constant 0 : i32
    return %c0_i32, %c0_i32_0 : i32, i32
  }
  func.func @transform_1(%arg0: i32) -> (i32, i32) {
    %c0_i32 = arith.constant 0 : i32
    %c0_i32_0 = arith.constant 0 : i32
    return %c0_i32, %arg0 : i32, i32
  }
  func.func @transform_2(%arg0: i32) -> (i32, i32) {
    %c0_i32 = arith.constant 0 : i32
    %c0_i32_0 = arith.constant 0 : i32
    return %arg0, %c0_i32 : i32, i32
  }
  func.func @transform_3(%arg0: i32) -> (i32, i32) {
    %c0_i32 = arith.constant 0 : i32
    %c0_i32_0 = arith.constant 0 : i32
    return %c0_i32, %arg0 : i32, i32
  }
  func.func @transform_4(%arg0: i32) -> (i32, i32) {
    %c0_i32 = arith.constant 0 : i32
    %c0_i32_0 = arith.constant 0 : i32
    return %c0_i32, %arg0 : i32, i32
  }
  func.func @transform_5(%arg0: i32) -> (i32, i32) {
    %c0_i32 = arith.constant 0 : i32
    %c0_i32_0 = arith.constant 0 : i32
    %c0_i32_1 = arith.constant 0 : i32
    return %c0_i32, %c0_i32_0 : i32, i32
  }
  func.func @transform_6(%arg0: i32) -> (i32, i32) {
    %c0_i32 = arith.constant 0 : i32
    %c0_i32_0 = arith.constant 0 : i32
    %c0_i32_1 = arith.constant 0 : i32
    return %c0_i32, %c0_i32_0 : i32, i32
  }
}

</mosaic_0001>

<bundles_post_ra>
// kernel: tpu_custom_call.1
= control target key start
LH: loop header
LB: loop body
LE: loop exit
PB: predicated region body
PF: predicated region fallthrough
CT: control target
= control target key end

     0   :  { %11 = vsyncpa [#allocation4], 0  ;;  %s968_s0 = inlined_call_operand.hbm [shape: f32[8,128], index: 0, kind: input, shape index: {}]   ;;  %s969_s1 = inlined_call_operand.hbm [shape: f32[128,128], index: 1, kind: input, shape index: {}]   ;;  %s970_s2 = inlined_call_operand.hbm [shape: f32[128,128], index: 2, kind: input, shape index: {}]   ;;  %s971_s3 = inlined_call_operand.hbm [shape: f32[128,128], index: 3, kind: input, shape index: {}]   ;;  %s972_s4 = inlined_call_operand.vmem [shape: f32[3,128], index: 4, kind: input, shape index: {}]   ;;  %s973_s5 = inlined_call_operand.vmem [shape: f32[2,128], index: 5, kind: input, shape index: {}]   ;;  %s974_s6 = inlined_call_operand.hbm [shape: f32[8,128], index: 6, kind: output, shape index: {}]  }
   0x1   :  { %12 = vsyncpa [#allocation7], 0 }
   0x2   :  { %13 = vsyncpa [#allocation10], 0 }
   0x3   :  { %14 = vsyncpa [#allocation5], 0  ;;  %s808_s21 = smov [#allocation6]   ;;  %s690_s25 = scalar_lea.hbm %s969_s1, 2048 }
   0x4   :  { %s30_s22 = sshll.u32 %s808_s21, 4  ;;  %p691_p0 = scmp.ne.s32.totalorder %s969_s1, %s690_s25  ;;  %s31_s22 = int_to_ptr.vmem [resolvable:$true] %s30_s22 }
   0x5   :  { %p694_p1 = scmp.lt.u32.totalorder %s690_s25, %s969_s1 }
   0x7   :  { %p696_p2 = pnand %p694_p1, %p691_p0 }
   0x9   :  { %699 = shalt.err (!%p696_p2)
}
   0xa   :  { %s700_s30 = scalar_lea.vmem %s31_s22, 2048  ;;  %p705_p4 = scmp.lt.s32.totalorder %s31_s22, %s31_s22 }
   0xb   :  { %p701_p3 = scmp.ne.s32.totalorder %s31_s22, %s700_s30  ;;  %p706_p5 = scmp.lt.s32.totalorder %s700_s30, %s700_s30 }
   0xd   :  { %p707_p6 = por %p706_p5, %p705_p4 }
   0xf   :  { %p708_p7 = pnand %p707_p6, %p701_p3 }
  0x11   :  { %711 = shalt.err (!%p708_p7)
}
  0x12   :  { %s809_s7 = smov 128   ;;  %s810_s8 = smov 8  }
  0x13   :  { %36 = dma.hbm_to_vmem [thread:$0]  %s969_s1, 2048, %s31_s22, [#allocation7], %s809_s7, %s809_s7, %s810_s8  }
  0x14   :  { %s811_s11 = smov [#allocation3]   ;;  %s812_s13 = smov [#allocation8]  }
  0x15   :  { %s21_s12 = sshll.u32 %s811_s11, 4  ;;  %s42_s14 = sshll.u32 %s812_s13, 4  ;;  %s22_s12 = int_to_ptr.vmem [resolvable:$true] %s21_s12  ;;  %s43_s14 = int_to_ptr.vmem [resolvable:$true] %s42_s14 }
  0x16   :  { %s712_s17 = scalar_lea.hbm %s968_s0, 128 }
  0x17   :  { %p713_p8 = scmp.ne.s32.totalorder %s968_s0, %s712_s17  ;;  %p716_p9 = scmp.lt.u32.totalorder %s712_s17, %s968_s0 }
  0x19   :  { %p718_p10 = pnand %p716_p9, %p713_p8 }
  0x1b   :  { %721 = shalt.err (!%p718_p10)
}
  0x1c   :  { %s722_s1 = scalar_lea.vmem %s22_s12, 128  ;;  %p727_p12 = scmp.lt.s32.totalorder %s22_s12, %s22_s12 }
  0x1d   :  { %p723_p11 = scmp.ne.s32.totalorder %s22_s12, %s722_s1  ;;  %p728_p13 = scmp.lt.s32.totalorder %s722_s1, %s722_s1 }
  0x1f   :  { %p729_p0 = por %p728_p13, %p727_p12 }
  0x21   :  { %p730_p1 = pnand %p729_p0, %p723_p11 }
  0x23   :  { %733 = shalt.err (!%p730_p1)
}
  0x24   :  { %24 = dma.hbm_to_vmem [thread:$0]  %s968_s0, 128, %s22_s12, [#allocation4]  }
  0x25   :  { %s734_s26 = scalar_lea.hbm %s970_s2, 2048 }
  0x26   :  { %p735_p2 = scmp.ne.s32.totalorder %s970_s2, %s734_s26  ;;  %p738_p3 = scmp.lt.u32.totalorder %s734_s26, %s970_s2 }
  0x28   :  { %p740_p4 = pnand %p738_p3, %p735_p2 }
  0x2a   :  { %743 = shalt.err (!%p740_p4)
}
  0x2b   :  { %s744_s9 = scalar_lea.vmem %s43_s14, 2048  ;;  %p749_p6 = scmp.lt.s32.totalorder %s43_s14, %s43_s14 }
  0x2c   :  { %p745_p5 = scmp.ne.s32.totalorder %s43_s14, %s744_s9  ;;  %p750_p7 = scmp.lt.s32.totalorder %s744_s9, %s744_s9 }
  0x2e   :  { %p751_p8 = por %p750_p7, %p749_p6 }
  0x30   :  { %p752_p9 = pnand %p751_p8, %p745_p5 }
  0x32   :  { %755 = shalt.err (!%p752_p9)
}
  0x33   :  { %48 = dma.hbm_to_vmem [thread:$0]  %s970_s2, 2048, %s43_s14, [#allocation7], %s809_s7, %s809_s7, %s810_s8  }
  0x34   :  { %s813_s11 = smov [#allocation9]   ;;  %s756_s16 = scalar_lea.hbm %s971_s3, 2048 }
  0x35   :  { %s54_s12 = sshll.u32 %s813_s11, 4  ;;  %p757_p10 = scmp.ne.s32.totalorder %s971_s3, %s756_s16  ;;  %s55_s12 = int_to_ptr.vmem [resolvable:$true] %s54_s12 }
  0x36   :  { %p760_p11 = scmp.lt.u32.totalorder %s756_s16, %s971_s3 }
  0x38   :  { %p762_p12 = pnand %p760_p11, %p757_p10 }
  0x3a   :  { %765 = shalt.err (!%p762_p12)
}
  0x3b   :  { %s766_s21 = scalar_lea.vmem %s55_s12, 2048  ;;  %p771_p0 = scmp.lt.s32.totalorder %s55_s12, %s55_s12 }
  0x3c   :  { %p767_p13 = scmp.ne.s32.totalorder %s55_s12, %s766_s21  ;;  %p772_p1 = scmp.lt.s32.totalorder %s766_s21, %s766_s21 }
  0x3e   :  { %p773_p2 = por %p772_p1, %p771_p0 }
  0x40   :  { %p774_p3 = pnand %p773_p2, %p767_p13 }
  0x42   :  { %777 = shalt.err (!%p774_p3)
}
  0x43   :  { %60 = dma.hbm_to_vmem [thread:$0]  %s971_s3, 2048, %s55_s12, [#allocation10], %s809_s7, %s809_s7, %s810_s8  }
  0x44   :  { %800 = dma.done.wait [#allocation4], 128  }
  0x45   :  { %801 = vsyncadd [#allocation4], 4294967168 }
  0x46   :  { %802 = dma.done.wait [#allocation7], 4096  }
  0x47   :  { %803 = vsyncadd [#allocation7], 4294963200 }
  0x48   :  { %804 = dma.done.wait [#allocation10], 2048  }
  0x49   :  { %805 = vsyncadd [#allocation10], 4294965248  ;;  %v814_v0 = vmov 0.0|0.0   ;;  %vm815_vm0 = vmmov 0   ;;  %v816_v1 = vmov 0.0   ;;  %v83_v2 = vld [vmem:[#allocation6] sm:$0xff] }
  0x4a   :  { %604 = vmatprep.subr.bf16.mxu0 %v814_v0  ;;  %531 = vmatprep.mubr.msk.f32.mxu0 %vm815_vm0, %v816_v1  ;;  %v84_v3 = vld [vmem:[#allocation6 + $0x8] sm:$0xff]  ;;  %v85_v4 = vld [vmem:[#allocation6 + $0x10] sm:$0xff]  ;;  %v86_v6 = vld [vmem:[#allocation6 + $0x18] sm:$0xff]  ;;  %s817_s28 = smov [#allocation11]  }
  0x4b   :  { %628 = vmatprep.subr.bf16.mxu1 %v814_v0  ;;  %566 = vmatprep.mubr.msk.f32.mxu1 %vm815_vm0, %v816_v1  ;;  %v605_v5 = vpack.c.bf16 %v84_v3, %v83_v2  ;;  %v608_v7 = vpack.c.bf16 %v86_v6, %v85_v4  ;;  %v87_v8 = vld [vmem:[#allocation6 + $0x20] sm:$0xff]  ;;  %v88_v9 = vld [vmem:[#allocation6 + $0x28] sm:$0xff]  ;;  %v89_v11 = vld [vmem:[#allocation6 + $0x30] sm:$0xff]  ;;  %s431_s29 = sshll.u32 %s817_s28, 4  ;;  %s432_s29 = int_to_ptr.vmem [resolvable:$true] %s431_s29 }
  0x4c   :  { %v611_v10 = vpack.c.bf16 %v88_v9, %v87_v8  ;;  %v90_v12 = vld [vmem:[#allocation6 + $0x38] sm:$0xff]  ;;  %v91_v14 = vld [vmem:[#allocation6 + $0x40] sm:$0xff]  ;;  %v92_v15 = vld [vmem:[#allocation6 + $0x48] sm:$0xff]  ;;  %s778_s30 = scalar_lea.vmem %s432_s29, 128  ;;  %p783_p5 = scmp.lt.s32.totalorder %s432_s29, %s432_s29 }
  0x4d   :  { %606 = vmatpush3.bf16.msra.mxu0 %v605_v5  ;;  %v614_v13 = vpack.c.bf16 %v90_v12, %v89_v11  ;;  %v617_v16 = vpack.c.bf16 %v92_v15, %v91_v14  ;;  %v93_v17 = vld [vmem:[#allocation6 + $0x50] sm:$0xff]  ;;  %v94_v18 = vld [vmem:[#allocation6 + $0x58] sm:$0xff]  ;;  %v95_v20 = vld [vmem:[#allocation6 + $0x60] sm:$0xff]  ;;  %p779_p4 = scmp.ne.s32.totalorder %s432_s29, %s778_s30  ;;  %p784_p6 = scmp.lt.s32.totalorder %s778_s30, %s778_s30 }
  0x4e   :  { %607 = vmatprep.subr.bf16.mxu0 %v814_v0  ;;  %v620_v19 = vpack.c.bf16 %v94_v18, %v93_v17  ;;  %v96_v21 = vld [vmem:[#allocation6 + $0x68] sm:$0xff]  ;;  %v97_v23 = vld [vmem:[#allocation6 + $0x70] sm:$0xff]  ;;  %v98_v24 = vld [vmem:[#allocation6 + $0x78] sm:$0xff] }
  0x4f   :  { %v623_v22 = vpack.c.bf16 %v96_v21, %v95_v20  ;;  %v626_v25 = vpack.c.bf16 %v98_v24, %v97_v23  ;;  %v921_v26 = vld [vmem:[#allocation3] sm:$0xff]  ;;  %v202_v27 = vld [vmem:[#allocation8] sm:$0xff]  ;;  %v203_v28 = vld [vmem:[#allocation8 + $0x8] sm:$0xff]  ;;  %p785_p7 = por %p784_p6, %p783_p5 }
  0x50   :  { %v629_v29 = vpack.c.bf16 %v203_v28, %v202_v27  ;;  %v204_v30 = vld [vmem:[#allocation8 + $0x10] sm:$0xff]  ;;  %v205_v31 = vld [vmem:[#allocation8 + $0x18] sm:$0xff]  ;;  %v206_v33 = vld [vmem:[#allocation8 + $0x20] sm:$0xff] }
  0x51   :  { %609 = vmatpush3.bf16.msra.mxu0 %v608_v7  ;;  %v632_v32 = vpack.c.bf16 %v205_v31, %v204_v30  ;;  %v207_v34 = vld [vmem:[#allocation8 + $0x28] sm:$0xff]  ;;  %v208_v36 = vld [vmem:[#allocation8 + $0x30] sm:$0xff]  ;;  %v209_v37 = vld [vmem:[#allocation8 + $0x38] sm:$0xff]  ;;  %p786_p8 = pnand %p785_p7, %p779_p4 }
  0x52   :  { %610 = vmatprep.subr.bf16.mxu0 %v814_v0  ;;  %630 = vmatpush3.bf16.msra.mxu1 %v629_v29  ;;  %v635_v35 = vpack.c.bf16 %v207_v34, %v206_v33  ;;  %v638_v38 = vpack.c.bf16 %v209_v37, %v208_v36  ;;  %v210_v39 = vld [vmem:[#allocation8 + $0x40] sm:$0xff]  ;;  %v211_v40 = vld [vmem:[#allocation8 + $0x48] sm:$0xff]  ;;  %v212_v42 = vld [vmem:[#allocation8 + $0x50] sm:$0xff] }
  0x53   :  { %631 = vmatprep.subr.bf16.mxu1 %v814_v0  ;;  %v641_v41 = vpack.c.bf16 %v211_v40, %v210_v39  ;;  %v213_v43 = vld [vmem:[#allocation8 + $0x58] sm:$0xff]  ;;  %v214_v45 = vld [vmem:[#allocation8 + $0x60] sm:$0xff]  ;;  %v215_v46 = vld [vmem:[#allocation8 + $0x68] sm:$0xff] }
  0x54   :  { %v644_v44 = vpack.c.bf16 %v213_v43, %v212_v42  ;;  %v647_v47 = vpack.c.bf16 %v215_v46, %v214_v45  ;;  %v216_v48 = vld [vmem:[#allocation8 + $0x70] sm:$0xff]  ;;  %v217_v49 = vld [vmem:[#allocation8 + $0x78] sm:$0xff]  ;;  %v291_v51 = vld [vmem:[#allocation9] sm:$0xff] }
  0x55   :  { %612 = vmatpush3.bf16.msra.mxu0 %v611_v10  ;;  %v650_v50 = vpack.c.bf16 %v217_v49, %v216_v48  ;;  %v292_v52 = vld [vmem:[#allocation9 + $0x8] sm:$0xff]  ;;  %v293_v53 = vld [vmem:[#allocation9 + $0x10] sm:$0xff]  ;;  %v294_v55 = vld [vmem:[#allocation9 + $0x18] sm:$0xff] }
  0x56   :  { %613 = vmatprep.subr.bf16.mxu0 %v814_v0  ;;  %633 = vmatpush3.bf16.msra.mxu1 %v632_v32  ;;  %v653_v54 = vpack.c.bf16 %v292_v52, %v291_v51  ;;  %v656_v56 = vpack.c.bf16 %v294_v55, %v293_v53  ;;  %v295_v57 = vld [vmem:[#allocation9 + $0x20] sm:$0xff]  ;;  %v296_v58 = vld [vmem:[#allocation9 + $0x28] sm:$0xff]  ;;  %v297_v60 = vld [vmem:[#allocation9 + $0x30] sm:$0xff] }
  0x57   :  { %634 = vmatprep.subr.bf16.mxu1 %v814_v0  ;;  %v659_v59 = vpack.c.bf16 %v296_v58, %v295_v57  ;;  %v298_v61 = vld [vmem:[#allocation9 + $0x38] sm:$0xff]  ;;  %v299_v63 = vld [vmem:[#allocation9 + $0x40] sm:$0xff]  ;;  %v301_v3 = vld [vmem:[#allocation9 + $0x50] sm:$0xff] }
  0x58   :  { %v662_v62 = vpack.c.bf16 %v298_v61, %v297_v60  ;;  %v302_v4 = vld [vmem:[#allocation9 + $0x58] sm:$0xff]  ;;  %v303_v6 = vld [vmem:[#allocation9 + $0x60] sm:$0xff]  ;;  %v304_v7 = vld [vmem:[#allocation9 + $0x68] sm:$0xff] }
  0x59   :  { %615 = vmatpush3.bf16.msra.mxu0 %v614_v13  ;;  %v668_v5 = vpack.c.bf16 %v302_v4, %v301_v3  ;;  %v671_v8 = vpack.c.bf16 %v304_v7, %v303_v6  ;;  %v305_v9 = vld [vmem:[#allocation9 + $0x70] sm:$0xff]  ;;  %v306_v10 = vld [vmem:[#allocation9 + $0x78] sm:$0xff] }
  0x5a   :  { %616 = vmatprep.subr.bf16.mxu0 %v814_v0  ;;  %636 = vmatpush3.bf16.msra.mxu1 %v635_v35  ;;  %v674_v11 = vpack.c.bf16 %v306_v10, %v305_v9  ;;  %v443_v31 = vld [vmem:[%s972_s4] ss:$0 sm:$0xff]  ;;  %v444_v33 = vld [vmem:[%s972_s4 + $0x1] ss:$0 sm:$0xff]  ;;  %v445_v60 = vld [vmem:[%s972_s4 + $0x2] ss:$0 sm:$0xff] }
  0x5b   :  { %637 = vmatprep.subr.bf16.mxu1 %v814_v0 }
  0x5d   :  { %618 = vmatpush3.bf16.msra.mxu0 %v617_v16 }
  0x5e   :  { %619 = vmatprep.subr.bf16.mxu0 %v814_v0  ;;  %639 = vmatpush3.bf16.msra.mxu1 %v638_v38 }
  0x5f   :  { %640 = vmatprep.subr.bf16.mxu1 %v814_v0 }
  0x61   :  { %621 = vmatpush3.bf16.msra.mxu0 %v620_v19 }
  0x62   :  { %622 = vmatprep.subr.bf16.mxu0 %v814_v0  ;;  %642 = vmatpush3.bf16.msra.mxu1 %v641_v41 }
  0x63   :  { %643 = vmatprep.subr.bf16.mxu1 %v814_v0 }
  0x65   :  { %624 = vmatpush3.bf16.msra.mxu0 %v623_v22 }
  0x66   :  { %625 = vmatprep.subr.bf16.mxu0 %v814_v0  ;;  %645 = vmatpush3.bf16.msra.mxu1 %v644_v44 }
  0x67   :  { %646 = vmatprep.subr.bf16.mxu1 %v814_v0 }
  0x69   :  { %627 = vmatpush3.bf16.msra.mxu0 %v626_v25 }
  0x6a   :  { %652 = vmatprep.subr.bf16.mxu0 %v814_v0  ;;  %648 = vmatpush3.bf16.msra.mxu1 %v647_v47 }
  0x6b   :  { %649 = vmatprep.subr.bf16.mxu1 %v814_v0 }
  0x6c   :  { %532 = vmatmul.mubr.f32.vlgmr.msra.gmra.mrb[0].mxu0 %v921_v26 }
  0x6d   :  { %601 = vmatprep.mubr.msk.f32.mxu0 %vm815_vm0, %v816_v1  ;;  %654 = vmatpush3.bf16.msra.mxu0 %v653_v54  ;;  %v300_v1 = vld [vmem:[#allocation9 + $0x48] sm:$0xff] }
  0x6e   :  { %651 = vmatpush3.bf16.msra.mxu1 %v650_v50  ;;  %655 = vmatprep.subr.bf16.mxu0 %v814_v0  ;;  %v665_v2 = vpack.c.bf16 %v300_v1, %v299_v63 }
  0x71   :  { %657 = vmatpush3.bf16.msra.mxu0 %v656_v56 }
  0x72   :  { %658 = vmatprep.subr.bf16.mxu0 %v814_v0 }
  0x75   :  { %660 = vmatpush3.bf16.msra.mxu0 %v659_v59  ;;  %v446_v59 = vld [vmem:[%s973_s5] ss:$0 sm:$0xff] }
  0x76   :  { %661 = vmatprep.subr.bf16.mxu0 %v814_v0 }
  0x79   :  { %663 = vmatpush3.bf16.msra.mxu0 %v662_v62  ;;  %v447_v62 = vld [vmem:[%s973_s5 + $0x1] ss:$0 sm:$0xff] }
  0x7a   :  { %664 = vmatprep.subr.bf16.mxu0 %v814_v0 }
  0x7d   :  { %666 = vmatpush3.bf16.msra.mxu0 %v665_v2 }
  0x7e   :  { %667 = vmatprep.subr.bf16.mxu0 %v814_v0 }
  0x81   :  { %669 = vmatpush3.bf16.msra.mxu0 %v668_v5 }
  0x82   :  { %670 = vmatprep.subr.bf16.mxu0 %v814_v0 }
  0x85   :  { %672 = vmatpush3.bf16.msra.mxu0 %v671_v8 }
  0x86   :  { %673 = vmatprep.subr.bf16.mxu0 %v814_v0 }
  0x89   :  { %675 = vmatpush3.bf16.msra.mxu0 %v674_v11 }
  0x8c   :  { %602 = vmatmul.mubr.f32.vlgmr.msra.gmra.mrb[2].mxu0 %v921_v26 }
 0x13f   :  { %v165_v12 = vpop.f32.mrb[0].mxu0 }
 0x140   :  { %v169_v13 = vrot.slane %v165_v12, 4  ;;  %v533_v14 = vpop.f32.mrb[1].mxu0 }
 0x142   :  { %v170_v15 = vadd.f32 %v169_v13, %v165_v12 }
 0x144   :  { %v171_v16 = vrot.slane %v170_v15, 2 }
 0x146   :  { %v172_v17 = vadd.f32 %v171_v16, %v170_v15 }
 0x148   :  { %v173_v18 = vrot.slane %v172_v17, 1 }
 0x14a   :  { %v174_v19 = vadd.f32 %v173_v18, %v172_v17 }
 0x14c   :  { %v175_v20 = vmul.f32 0.125, %v174_v19 }
 0x14e   :  { %v176_v21 = vsub.f32 %v165_v12, %v175_v20 }
 0x150   :  { %v177_v22 = vmul.f32 %v176_v21, %v176_v21 }
 0x152   :  { %v178_v23 = vrot.slane %v177_v22, 4 }
 0x154   :  { %v179_v24 = vadd.f32 %v178_v23, %v177_v22 }
 0x156   :  { %v180_v25 = vrot.slane %v179_v24, 2 }
 0x158   :  { %v181_v27 = vadd.f32 %v180_v25, %v179_v24 }
 0x15a   :  { %v182_v28 = vrot.slane %v181_v27, 1 }
 0x15c   :  { %v183_v0 = vadd.f32 %v182_v28, %v181_v27 }
 0x15e   :  { %v184_v29 = vmul.f32 0.125, %v183_v0 }
 0x15f   :  { %v378_v37 = vpop.f32.mrb[2].mxu0 }
 0x160   :  { %v185_v30 = vadd.f32 1e-05, %v184_v29  ;;  %v603_v38 = vpop.f32.mrb[3].mxu0  ;;  %v379_v1 = vadd.f32 %v445_v60, %v378_v37 }
 0x162   :  { %686 = vrsqrt.f32 %v185_v30 }
 0x16c   :  { %v687_v26 = vpop.eup %686 }
 0x16d   :  { %v187_v32 = vmul.f32 %v687_v26, %v176_v21 }
 0x16f   :  { %v193_v34 = vmul.f32 %v443_v31, %v187_v32 }
 0x171   :  { %v199_v35 = vadd.f32 %v444_v33, %v193_v34 }
 0x173   :  { %v200_v36 = vmax.f32 %v199_v35, 0.0 }
 0x175   :  { %567 = vmatmul.mubr.f32.vlgmr.msra.gmra.mrb[0].mxu1 %v200_v36 }
 0x248   :  { %v284_v39 = vpop.f32.mrb[0].mxu1 }
 0x249   :  { %v390_v40 = vrot.slane %v284_v39, 4  ;;  %v568_v41 = vpop.f32.mrb[1].mxu1 }
 0x24b   :  { %v391_v42 = vadd.f32 %v390_v40, %v284_v39 }
 0x24d   :  { %v392_v43 = vrot.slane %v391_v42, 2 }
 0x24f   :  { %v393_v44 = vadd.f32 %v392_v43, %v391_v42 }
 0x251   :  { %v394_v45 = vrot.slane %v393_v44, 1 }
 0x253   :  { %v395_v46 = vadd.f32 %v394_v45, %v393_v44 }
 0x255   :  { %v396_v47 = vmul.f32 0.125, %v395_v46 }
 0x257   :  { %v397_v48 = vsub.f32 %v284_v39, %v396_v47 }
 0x259   :  { %v398_v49 = vmul.f32 %v397_v48, %v397_v48 }
 0x25b   :  { %v399_v50 = vrot.slane %v398_v49, 4 }
 0x25d   :  { %v400_v51 = vadd.f32 %v399_v50, %v398_v49 }
 0x25f   :  { %v401_v52 = vrot.slane %v400_v51, 2 }
 0x261   :  { %v402_v53 = vadd.f32 %v401_v52, %v400_v51 }
 0x263   :  { %v403_v54 = vrot.slane %v402_v53, 1 }
 0x265   :  { %v404_v55 = vadd.f32 %v403_v54, %v402_v53 }
 0x267   :  { %v405_v56 = vmul.f32 0.125, %v404_v55 }
 0x269   :  { %v406_v57 = vadd.f32 1e-05, %v405_v56 }
 0x26b   :  { %688 = vrsqrt.f32 %v406_v57 }
 0x275   :  { %v689_v58 = vpop.eup %688 }
 0x276   :  { %v408_v61 = vmul.f32 %v689_v58, %v397_v48 }
 0x278   :  { %v414_v63 = vmul.f32 %v446_v59, %v408_v61 }
 0x27a   :  { %v420_v2 = vadd.f32 %v447_v62, %v414_v63 }
 0x27c   :  { %v422_v3 = vadd.f32 %v420_v2, %v379_v1 }
 0x27e   :  { %v423_v4 = vmax.f32 %v422_v3, 0.0 }
 0x280   :  { %424 = vst [vmem:[#allocation11] sm:$0xff] %v423_v4 }
 0x281   :  { %789 = shalt.err (!%p786_p8)
}
 0x282   :  { %s790_s5 = scalar_lea.hbm %s974_s6, 128 }
 0x283   :  { %p791_p9 = scmp.ne.s32.totalorder %s974_s6, %s790_s5  ;;  %p794_p10 = scmp.lt.u32.totalorder %s790_s5, %s974_s6 }
 0x285   :  { %p796_p11 = pnand %p794_p10, %p791_p9 }
 0x287   :  { %799 = shalt.err (!%p796_p11)
}
 0x288   :  { %434 = dma.vmem_to_hbm [thread:$0]  %s432_s29, 128, %s974_s6, [#allocation5]  }
 0x289   :  { %806 = dma.done.wait [#allocation5], 128  }
 0x28a   :  { %807 = vsyncadd [#allocation5], 4294967168 }
 0x28b   :  { %438 = vsyncpa [#allocation4], 1 }
 0x28c   :  { %439 = vsyncpa [#allocation7], 1 }
 0x28d   :  { %440 = vsyncpa [#allocation10], 1 }
 0x28e   :  { %441 = vsyncpa [#allocation5], 1 }

</bundles_post_ra>
